<compile_context>
chip_gen: v6e
topology: v6e:2x2x1
jax: 0.10.0
libtpu: 0.0.40
codegen_flags: <defaults>
</compile_context>

<pallas_src>
import functools

import jax
import jax.numpy as jnp
from jax.experimental import pallas as pl
from jax.experimental.pallas import tpu as pltpu

NEG_SLOPE = 0.01  # PyTorch default negative_slope for leaky_relu


def _leaky_relu(x):
    return jnp.where(x > 0, x, NEG_SLOPE * x)


def mlp_kernel(x_ref, w1t_ref, b1_ref, w2_ref, b2_ref, o_ref):
    # Layer 1: (TM, 128) @ (128, 32) + (1, 32), MXU matmul (K=128 = one pass).
    x = x_ref[...]
    h = jnp.dot(x, w1t_ref[...], preferred_element_type=jnp.float32)
    h = _leaky_relu(h + b1_ref[...])
    # Layer 2: (TM, 32) x (1, 32) -> (TM, 1).  N=1 output, so skip the MXU and
    # use a VPU multiply + row reduction.
    y = jnp.sum(h * w2_ref[...], axis=-1, keepdims=True) + b2_ref[...]
    o_ref[...] = _leaky_relu(y).astype(o_ref.dtype)


def _round_up(n, m):
    return ((n + m - 1) // m) * m


@functools.partial(jax.jit, static_argnames=("tm",))
def linear_forward(x, w1, b1, w2, b2, *, tm=2048):
    """x: (B, 128) f32.  w1: (32, 128), b1: (32,), w2: (1, 32), b2: (1,).

    Returns (B, 1) f32, matching PyTorch Linear.forward().
    """
    B, K = x.shape
    assert K == 128, K

    # Batch tile size: at most `tm`, at least the (8,)-aligned batch size.
    TM = min(tm, _round_up(B, 8))
    B_pad = _round_up(B, TM)
    if B_pad != B:
        x = jnp.pad(x, ((0, B_pad - B), (0, 0)))

    # One-time layout prep in the XLA wrapper (not repeated per grid step).
    w1t = jnp.transpose(w1)          # (128, 32)
    b1_2d = b1.reshape(1, 32)        # broadcast along batch inside the kernel
    w2_2d = w2.reshape(1, 32)        # kept in PyTorch layout for the VPU path
    b2_2d = b2.reshape(1, 1)

    grid = (B_pad // TM,)

    out = pl.pallas_call(
        mlp_kernel,
        out_shape=jax.ShapeDtypeStruct((B_pad, 1), jnp.float32),
        grid_spec=pltpu.PrefetchScalarGridSpec(
            num_scalar_prefetch=0,
            grid=grid,
            in_specs=[
                # x: batch-tiled, double-buffered by Pallas.
                pl.BlockSpec((TM, 128), lambda i: (i, 0)),
                # Weights / biases: constant block index -> VMEM-resident.
                pl.BlockSpec((128, 32), lambda i: (0, 0)),
                pl.BlockSpec((1, 32), lambda i: (0, 0)),
                pl.BlockSpec((1, 32), lambda i: (0, 0)),
                pl.BlockSpec((1, 1), lambda i: (0, 0)),
            ],
            out_specs=pl.BlockSpec((TM, 1), lambda i: (i, 0)),
        ),
        compiler_params=pltpu.CompilerParams(
            dimension_semantics=("parallel",),   # 2-TC sharding on v7x
            vmem_limit_bytes=32 * 1024 * 1024,   # plenty of headroom everywhere
        ),
    )(x, w1t, b1_2d, w2_2d, b2_2d)

    return out[:B]


def init_params(key):
    """PyTorch nn.Linear default init: uniform(+/- 1/sqrt(fan_in))."""
    k1, k2, k3, k4 = jax.random.split(key, 4)
    bound1 = 1.0 / jnp.sqrt(128.0)
    bound2 = 1.0 / jnp.sqrt(32.0)
    w1 = jax.random.uniform(k1, (32, 128), jnp.float32, -bound1, bound1)
    b1 = jax.random.uniform(k2, (32,), jnp.float32, -bound1, bound1)
    w2 = jax.random.uniform(k3, (1, 32), jnp.float32, -bound2, bound2)
    b2 = jax.random.uniform(k4, (1,), jnp.float32, -bound2, bound2)
    return w1, b1, w2, b2


def reference_forward(x, w1, b1, w2, b2):
    h = _leaky_relu(x @ w1.T + b1)
    return _leaky_relu(h @ w2.T + b2)


if __name__ == "__main__":
    key = jax.random.PRNGKey(0)
    kx, kx2, kp = jax.random.split(key, 3)
    w1, b1, w2, b2 = init_params(kp)

    # Small shape consistent with the module: batch=8, in_features=128.
    B = 8
    x = jax.random.normal(kx, (B, 128), jnp.float32)
    out = jax.block_until_ready(linear_forward(x, w1, b1, w2, b2))
    ref = reference_forward(x, w1, b1, w2, b2)
    assert out.shape == (B, 1), out.shape
    assert jnp.allclose(out, ref, atol=1e-5, rtol=1e-5), "mismatch vs reference (B=8)"

    # Exercise the batch grid + ragged-tail padding path (B not a multiple of TM).
    B2 = 300
    x2 = jax.random.normal(kx2, (B2, 128), jnp.float32)
    out2 = jax.block_until_ready(linear_forward(x2, w1, b1, w2, b2, tm=128))
    ref2 = reference_forward(x2, w1, b1, w2, b2)
    assert out2.shape == (B2, 1), out2.shape
    assert jnp.allclose(out2, ref2, atol=1e-5, rtol=1e-5), "mismatch vs reference (B=300)"

    print("KERNEL_OK")
</pallas_src>

<mosaic_0001>
module attributes {stable_mosaic.version = 11 : i64} {
  func.func @mlp_kernel(%arg0: i32, %arg1: memref<8x128xf32, #tpu.memory_space<vmem>>, %arg2: memref<128x32xf32, #tpu.memory_space<vmem>>, %arg3: memref<1x32xf32, #tpu.memory_space<vmem>>, %arg4: memref<1x32xf32, #tpu.memory_space<vmem>>, %arg5: memref<1x1xf32, #tpu.memory_space<vmem>>, %arg6: memref<8x1xf32, #tpu.memory_space<vmem>>) attributes {dimension_semantics = [#tpu.dimension_semantics<parallel>], iteration_bounds = array<i64: 1>, scalar_prefetch = 0 : i64, scratch_operands = 0 : i64, tpu.core_type = #tpu.core_type<tc>, window_params = [{transform_indices = @transform_0, window_bounds = array<i64: 8, 128>}, {pipeline_mode = #tpu.pipeline_mode<synchronous>, transform_indices = @transform_1, window_bounds = array<i64: 128, 32>}, {pipeline_mode = #tpu.pipeline_mode<synchronous>, transform_indices = @transform_2, window_bounds = array<i64: 1, 32>}, {pipeline_mode = #tpu.pipeline_mode<synchronous>, transform_indices = @transform_3, window_bounds = array<i64: 1, 32>}, {pipeline_mode = #tpu.pipeline_mode<synchronous>, transform_indices = @transform_4, window_bounds = array<i64: 1, 1>}, {transform_indices = @transform_5, window_bounds = array<i64: 8, 1>}]} {
    %c0 = arith.constant 0 : index
    %c0_0 = arith.constant 0 : index
    %0 = vector.load %arg1[%c0, %c0_0] : memref<8x128xf32, #tpu.memory_space<vmem>>, vector<8x128xf32>
    %c0_1 = arith.constant 0 : index
    %c0_2 = arith.constant 0 : index
    %1 = vector.load %arg2[%c0_1, %c0_2] : memref<128x32xf32, #tpu.memory_space<vmem>>, vector<128x32xf32>
    %cst = arith.constant dense<0.000000e+00> : vector<8x32xf32>
    %2 = tpu.matmul %0, %1, %cst {dimension_numbers = #tpu.dot_dimension_numbers<[1], [0], [0], [1], [0, 0, 1, 1], [], []>} : vector<8x128xf32>, vector<128x32xf32>, vector<8x32xf32> -> vector<8x32xf32>
    %c0_3 = arith.constant 0 : index
    %c0_4 = arith.constant 0 : index
    %3 = vector.load %arg3[%c0_3, %c0_4] : memref<1x32xf32, #tpu.memory_space<vmem>>, vector<1x32xf32>
    %4 = vector.broadcast %3 : vector<1x32xf32> to vector<8x32xf32>
    %5 = arith.addf %2, %4 : vector<8x32xf32>
    %cst_5 = arith.constant 0.000000e+00 : f32
    %6 = vector.broadcast %cst_5 : f32 to vector<8x32xf32>
    %7 = arith.cmpf ogt, %5, %6 : vector<8x32xf32>
    %cst_6 = arith.constant 0.00999999977 : f32
    %8 = vector.broadcast %cst_6 : f32 to vector<8x32xf32>
    %9 = arith.mulf %8, %5 : vector<8x32xf32>
    %10 = arith.select %7, %5, %9 : vector<8x32xi1>, vector<8x32xf32>
    %c0_7 = arith.constant 0 : index
    %c0_8 = arith.constant 0 : index
    %11 = vector.load %arg4[%c0_7, %c0_8] : memref<1x32xf32, #tpu.memory_space<vmem>>, vector<1x32xf32>
    %12 = vector.broadcast %11 : vector<1x32xf32> to vector<8x32xf32>
    %13 = arith.mulf %10, %12 : vector<8x32xf32>
    %cst_9 = arith.constant dense<0.000000e+00> : vector<8xf32>
    %14 = vector.multi_reduction <add>, %13, %cst_9 [1] : vector<8x32xf32> to vector<8xf32>
    %15 = vector.shape_cast %14 : vector<8xf32> to vector<8x1xf32>
    %c0_10 = arith.constant 0 : index
    %c0_11 = arith.constant 0 : index
    %16 = vector.load %arg5[%c0_10, %c0_11] : memref<1x1xf32, #tpu.memory_space<vmem>>, vector<1x1xf32>
    %17 = vector.broadcast %16 : vector<1x1xf32> to vector<8x1xf32>
    %18 = arith.addf %15, %17 : vector<8x1xf32>
    %cst_12 = arith.constant 0.000000e+00 : f32
    %19 = vector.broadcast %cst_12 : f32 to vector<8x1xf32>
    %20 = arith.cmpf ogt, %18, %19 : vector<8x1xf32>
    %cst_13 = arith.constant 0.00999999977 : f32
    %21 = vector.broadcast %cst_13 : f32 to vector<8x1xf32>
    %22 = arith.mulf %21, %18 : vector<8x1xf32>
    %23 = arith.select %20, %18, %22 : vector<8x1xi1>, vector<8x1xf32>
    %c0_14 = arith.constant 0 : index
    %c0_15 = arith.constant 0 : index
    %24 = vector.load %arg6[%c0_14, %c0_15] : memref<8x1xf32, #tpu.memory_space<vmem>>, vector<8x1xf32>
    tpu.vector_store %arg6[%c0_14, %c0_15], %23 {strides = array<i32>} : memref<8x1xf32, #tpu.memory_space<vmem>>, vector<8x1xf32>,
    return
  }
  func.func @transform_0(%arg0: i32) -> (i32, i32) {
    %c0_i32 = arith.constant 0 : i32
    %c0_i32_0 = arith.constant 0 : i32
    return %arg0, %c0_i32 : i32, i32
  }
  func.func @transform_1(%arg0: i32) -> (i32, i32) {
    %c0_i32 = arith.constant 0 : i32
    %c0_i32_0 = arith.constant 0 : i32
    %c0_i32_1 = arith.constant 0 : i32
    return %c0_i32, %c0_i32_0 : i32, i32
  }
  func.func @transform_2(%arg0: i32) -> (i32, i32) {
    %c0_i32 = arith.constant 0 : i32
    %c0_i32_0 = arith.constant 0 : i32
    %c0_i32_1 = arith.constant 0 : i32
    return %c0_i32, %c0_i32_0 : i32, i32
  }
  func.func @transform_3(%arg0: i32) -> (i32, i32) {
    %c0_i32 = arith.constant 0 : i32
    %c0_i32_0 = arith.constant 0 : i32
    %c0_i32_1 = arith.constant 0 : i32
    return %c0_i32, %c0_i32_0 : i32, i32
  }
  func.func @transform_4(%arg0: i32) -> (i32, i32) {
    %c0_i32 = arith.constant 0 : i32
    %c0_i32_0 = arith.constant 0 : i32
    %c0_i32_1 = arith.constant 0 : i32
    return %c0_i32, %c0_i32_0 : i32, i32
  }
  func.func @transform_5(%arg0: i32) -> (i32, i32) {
    %c0_i32 = arith.constant 0 : i32
    %c0_i32_0 = arith.constant 0 : i32
    return %arg0, %c0_i32 : i32, i32
  }
}

</mosaic_0001>

<bundles_post_ra>
// kernel: linear_forward.1
= control target key start
LH: loop header
LB: loop body
LE: loop exit
PB: predicated region body
PF: predicated region fallthrough
CT: control target
= control target key end

     0   :  { %v205_v0 = vmov 0.0   ;;  %vm206_vm0 = vmmov 0   ;;  %vm127_vm2 = vcmask 261120   ;;  %vm142_vm4 = vcmask 7168   ;;  %s300_s1 = inlined_call_operand.vmem [shape: f32[128,32], index: 1, kind: input, shape index: {}]   ;;  %s301_s0 = inlined_call_operand.vmem [shape: f32[8,128], index: 0, kind: input, shape index: {}]   ;;  %s302_s4 = inlined_call_operand.<no memory space> [shape: f32[1,1], index: 4, kind: input, shape index: {}]   ;;  %s303_s2 = inlined_call_operand.vmem [shape: f32[1,32], index: 2, kind: input, shape index: {}]   ;;  %s304_s3 = inlined_call_operand.vmem [shape: f32[1,32], index: 3, kind: input, shape index: {}]   ;;  %s305_s5 = inlined_call_operand.vmem [shape: f32[8,1], index: 5, kind: output, shape index: {}]  }
   0x1   :  { %168 = vmatprep.subr.mxu0 %v205_v0  ;;  %v38_v1 = vld [vmem:[%s300_s1 + $0x78] sm:$0xff]  ;;  %v37_v2 = vld [vmem:[%s300_s1 + $0x70] sm:$0xff]  ;;  %200 = vmatprep.mubr.msk.f32.mxu0 %vm206_vm0, %v205_v0  ;;  %v36_v3 = vld [vmem:[%s300_s1 + $0x68] sm:$0xff]  ;;  %v10_v18 = vstv %s302_s4 }
   0x2   :  { %169 = vmatpush3.msra.mxu0 %v38_v1  ;;  %v35_v4 = vld [vmem:[%s300_s1 + $0x60] sm:$0xff]  ;;  %v34_v5 = vld [vmem:[%s300_s1 + $0x58] sm:$0xff]  ;;  %v33_v6 = vld [vmem:[%s300_s1 + $0x50] sm:$0xff]  ;;  %11 = vst [vmem:[#allocation2] sm:$0x1] %v10_v18 }
   0x3   :  { %170 = vmatprep.subr.mxu0 %v205_v0  ;;  %v32_v7 = vld [vmem:[%s300_s1 + $0x48] sm:$0xff]  ;;  %v31_v8 = vld [vmem:[%s300_s1 + $0x40] sm:$0xff]  ;;  %v30_v9 = vld [vmem:[%s300_s1 + $0x38] sm:$0xff] }
   0x4   :  { %171 = vmatpush3.msra.mxu0 %v37_v2  ;;  %v29_v10 = vld [vmem:[%s300_s1 + $0x30] sm:$0xff]  ;;  %v28_v11 = vld [vmem:[%s300_s1 + $0x28] sm:$0xff]  ;;  %v27_v12 = vld [vmem:[%s300_s1 + $0x20] sm:$0xff] }
   0x5   :  { %172 = vmatprep.subr.mxu0 %v205_v0  ;;  %v26_v13 = vld [vmem:[%s300_s1 + $0x18] sm:$0xff]  ;;  %v25_v14 = vld [vmem:[%s300_s1 + $0x10] sm:$0xff]  ;;  %v24_v15 = vld [vmem:[%s300_s1 + $0x8] sm:$0xff] }
   0x6   :  { %173 = vmatpush3.msra.mxu0 %v36_v3  ;;  %v23_v16 = vld [vmem:[%s300_s1] sm:$0xff] }
   0x7   :  { %174 = vmatprep.subr.mxu0 %v205_v0  ;;  %v22_v17 = vld [vmem:[%s301_s0] sm:$0xff] }
   0x8   :  { %175 = vmatpush3.msra.mxu0 %v35_v4  ;;  %v148_v19 = vld [vmem:[%s303_s2] ss:$0 sm:$0xff] }
   0x9   :  { %176 = vmatprep.subr.mxu0 %v205_v0  ;;  %v149_v24 = vld [vmem:[%s304_s3] ss:$0 sm:$0xff] }
   0xa   :  { %177 = vmatpush3.msra.mxu0 %v34_v5  ;;  %v150_v28 = vld [vmem:[#allocation2] ss:$0 sm:$0xff] }
   0xb   :  { %178 = vmatprep.subr.mxu0 %v205_v0 }
   0xc   :  { %179 = vmatpush3.msra.mxu0 %v33_v6 }
   0xd   :  { %180 = vmatprep.subr.mxu0 %v205_v0 }
   0xe   :  { %181 = vmatpush3.msra.mxu0 %v32_v7 }
   0xf   :  { %182 = vmatprep.subr.mxu0 %v205_v0 }
  0x10   :  { %183 = vmatpush3.msra.mxu0 %v31_v8 }
  0x11   :  { %184 = vmatprep.subr.mxu0 %v205_v0 }
  0x12   :  { %185 = vmatpush3.msra.mxu0 %v30_v9 }
  0x13   :  { %186 = vmatprep.subr.mxu0 %v205_v0 }
  0x14   :  { %187 = vmatpush3.msra.mxu0 %v29_v10 }
  0x15   :  { %188 = vmatprep.subr.mxu0 %v205_v0 }
  0x16   :  { %189 = vmatpush3.msra.mxu0 %v28_v11 }
  0x17   :  { %190 = vmatprep.subr.mxu0 %v205_v0 }
  0x18   :  { %191 = vmatpush3.msra.mxu0 %v27_v12 }
  0x19   :  { %192 = vmatprep.subr.mxu0 %v205_v0 }
  0x1a   :  { %193 = vmatpush3.msra.mxu0 %v26_v13 }
  0x1b   :  { %194 = vmatprep.subr.mxu0 %v205_v0 }
  0x1c   :  { %195 = vmatpush3.msra.mxu0 %v25_v14 }
  0x1d   :  { %196 = vmatprep.subr.mxu0 %v205_v0 }
  0x1e   :  { %197 = vmatpush3.msra.mxu0 %v24_v15 }
  0x1f   :  { %198 = vmatprep.subr.mxu0 %v205_v0 }
  0x20   :  { %199 = vmatpush3.msra.mxu0 %v23_v16 }
  0x21   :  { %201 = vmatmul.mubr.f32.vlgmr.msra.gmra.mxu0 %v22_v17 }
  0xe1   :  { %v112_v20 = vpop.f32.mrf.mxu0 }
  0xe2   :  { %v113_v21 = vadd.f32 %v148_v19, %v112_v20 }
  0xe3   :  { %v202_v22 = vpop.f32.mrf.mxu0 }
  0xe4   :  { %v117_v23 = vmul.f32 0.01, %v113_v21  ;;  %vm116_vm1 = vcmp.gt.f32.partialorder %v113_v21, 0.0 }
  0xe6   :  { %v118_v25 = vsel %vm116_vm1, %v113_v21, %v117_v23 }
  0xe7   :  { %v126_v26 = vmul.f32 %v149_v24, %v118_v25 }
  0xe9   :  { %v128_v27 = vsel %vm127_vm2, %v126_v26, 0.0 }
  0xea   :  { %129 = vadd.xlane.f32.xlu0 %v128_v27 }
 0x173   :  { %v130_v29 = vpop.xlane.xlu0 %129 }
 0x174   :  { %v138_v30 = vadd.f32 %v150_v28, %v130_v29 }
 0x176   :  { %vm139_vm3 = vcmp.gt.f32.partialorder %v138_v30, 0.0  ;;  %v140_v31 = vmul.f32 0.01, %v138_v30 }
 0x178   :  { %v141_v32 = vsel %vm139_vm3, %v138_v30, %v140_v31 }
 0x179   :  { %143 = vst.msk [vmem:[%s305_s5] sm:$0xff] %vm142_vm4, %v141_v32 }

</bundles_post_ra>
